<compile_context>
chip_gen: v6e
topology: v6e:2x2x1
jax: 0.10.0
libtpu: 0.0.40
codegen_flags: <defaults>
</compile_context>

<pallas_src>
import functools
import math

import jax
import jax.numpy as jnp
from jax.experimental import pallas as pl
from jax.experimental.pallas import tpu as pltpu


def _round_up(x, m):
    return ((x + m - 1) // m) * m


def _patch_embed_kernel(p_ref, w_ref, b_ref, g_ref, beta_ref, o_ref, *, e_real, eps):
    # p_ref: (TN, Kp) bf16/f32, w_ref: (Kp, Ep) bf16/f32,
    # b/g/beta: (1, Ep) f32, o_ref: (TN, Ep) f32.
    acc = jnp.dot(p_ref[...], w_ref[...], preferred_element_type=jnp.float32)
    acc = acc + b_ref[...]                       # conv bias (padded cols are zero)

    # One-pass LayerNorm statistics over the *real* embed_dim.  Padded weight
    # columns / bias entries are zero, so they contribute nothing to the sums.
    inv_e = 1.0 / float(e_real)
    mean = jnp.sum(acc, axis=-1, keepdims=True) * inv_e
    mean_sq = jnp.sum(acc * acc, axis=-1, keepdims=True) * inv_e
    var = mean_sq - mean * mean
    inv = jax.lax.rsqrt(var + eps)
    # Padded gamma/beta are zero -> padded output columns are exactly zero.
    y = (acc - mean) * inv * g_ref[...] + beta_ref[...]
    o_ref[...] = y.astype(o_ref.dtype)


def overlap_patch_embed(x, w_conv, b_conv, gamma, beta, *, patch_size=7, stride=4,
                        token_tile=256, use_bf16=True, eps=1e-5):
    """x: (B, C, H, W) NCHW float32.  Returns (tokens, H_out, W_out)."""
    B, C, H, W = x.shape
    E = w_conv.shape[0]
    kh = kw = patch_size
    pad = patch_size // 2

    H_out = (H + 2 * pad - kh) // stride + 1
    W_out = (W + 2 * pad - kw) // stride + 1
    N_tokens = B * H_out * W_out
    K = C * kh * kw

    # ---- im2col in (kh, kw, C)-last order: one NHWC transpose of x, no 6-D
    # transpose of the blown-up patch tensor ---------------------------------
    x_nhwc = jnp.transpose(x, (0, 2, 3, 1))                        # (B, H, W, C)
    x_pad = jnp.pad(x_nhwc, ((0, 0), (pad, pad), (pad, pad), (0, 0)))
    slabs = []
    for di in range(kh):
        for dj in range(kw):
            slabs.append(
                x_pad[:, di:di + (H_out - 1) * stride + 1:stride,
                         dj:dj + (W_out - 1) * stride + 1:stride, :])  # (B,Ho,Wo,C)
    patches = jnp.stack(slabs, axis=3)               # (B, Ho, Wo, kh*kw, C)
    patches = patches.reshape(N_tokens, K)           # contiguous, no transpose
    # TODO(synk): fold im2col into the kernel (strided DMA of x_pad slabs from
    # HBM, kh*kw shifted matmuls into a VMEM accumulator) to avoid
    # materializing the ~(kh*kw/stride^2)-x patches tensor in HBM.

    # ---- pad to MXU / lane friendly sizes ----------------------------------
    K_pad = _round_up(K, 128)
    E_pad = _round_up(E, 128)
    tile = min(_round_up(token_tile, 8), _round_up(N_tokens, 8))
    N_pad = _round_up(N_tokens, tile)

    compute_dtype = jnp.bfloat16 if use_bf16 else jnp.float32
    patches_p = jnp.pad(patches, ((0, N_pad - N_tokens), (0, K_pad - K)))
    patches_p = patches_p.astype(compute_dtype)

    # weight: (E, C, kh, kw) -> (kh, kw, C, E) -> (K, E): matches patch ordering.
    w_mat = jnp.transpose(w_conv, (2, 3, 1, 0)).reshape(K, E)
    w_mat = jnp.pad(w_mat, ((0, K_pad - K), (0, E_pad - E))).astype(compute_dtype)

    b_row = jnp.pad(b_conv.reshape(1, E), ((0, 0), (0, E_pad - E))).astype(jnp.float32)
    g_row = jnp.pad(gamma.reshape(1, E), ((0, 0), (0, E_pad - E))).astype(jnp.float32)
    beta_row = jnp.pad(beta.reshape(1, E), ((0, 0), (0, E_pad - E))).astype(jnp.float32)

    grid = (N_pad // tile,)
    itemsize = 2 if use_bf16 else 4
    cost = pl.CostEstimate(
        flops=2 * N_pad * K_pad * E_pad,
        transcendentals=0,
        bytes_accessed=(N_pad * K_pad + K_pad * E_pad) * itemsize
                       + N_pad * E_pad * 4 + 3 * E_pad * 4)

    kernel = functools.partial(_patch_embed_kernel, e_real=E, eps=eps)

    out = pl.pallas_call(
        kernel,
        out_shape=jax.ShapeDtypeStruct((N_pad, E_pad), jnp.float32),
        grid_spec=pltpu.PrefetchScalarGridSpec(
            num_scalar_prefetch=0,
            grid=grid,
            in_specs=[
                pl.BlockSpec((tile, K_pad), lambda i: (i, 0)),     # patches tile
                pl.BlockSpec((K_pad, E_pad), lambda i: (0, 0)),    # weight (resident)
                pl.BlockSpec((1, E_pad), lambda i: (0, 0)),        # conv bias
                pl.BlockSpec((1, E_pad), lambda i: (0, 0)),        # LN gamma
                pl.BlockSpec((1, E_pad), lambda i: (0, 0)),        # LN beta
            ],
            out_specs=pl.BlockSpec((tile, E_pad), lambda i: (i, 0)),
        ),
        compiler_params=pltpu.CompilerParams(
            dimension_semantics=("parallel",),
            vmem_limit_bytes=64 << 20),
        cost_estimate=cost,
    )(patches_p, w_mat, b_row, g_row, beta_row)

    tokens = out[:N_tokens, :E].reshape(B, H_out * W_out, E)  # == flatten(2).transpose(1,2)
    return tokens, H_out, W_out


if __name__ == "__main__":
    # Small shapes consistent with the module: img 16x16, patch 7, stride 4,
    # in_chans 4, embed_dim 32, batch 2.
    B, C, HW = 2, 4, 16
    E, P, S = 32, 7, 4

    key = jax.random.PRNGKey(0)
    kx, kw = jax.random.split(key)

    x = jax.random.normal(kx, (B, C, HW, HW), dtype=jnp.float32)

    # Deterministic init mirroring _init_weights:
    #   conv weight ~ N(0, sqrt(2/fan_out)), fan_out = kh*kw*embed_dim
    fan_out = P * P * E
    w_conv = jax.random.normal(kw, (E, C, P, P), dtype=jnp.float32) * math.sqrt(2.0 / fan_out)
    b_conv = jnp.zeros((E,), dtype=jnp.float32)
    gamma = jnp.ones((E,), dtype=jnp.float32)     # LayerNorm weight = 1
    beta = jnp.zeros((E,), dtype=jnp.float32)     # LayerNorm bias = 0

    tokens, H_out, W_out = overlap_patch_embed(
        x, w_conv, b_conv, gamma, beta, patch_size=P, stride=S)
    jax.block_until_ready(tokens)

    # Reference: f32 conv + LayerNorm on bf16-rounded operands.  The kernel
    # feeds bf16 operands to the MXU with f32 accumulation, so rounding the
    # reference inputs the same way makes this an apples-to-apples check.
    x_q = x.astype(jnp.bfloat16).astype(jnp.float32)
    w_q = w_conv.astype(jnp.bfloat16).astype(jnp.float32)
    ref_conv = jax.lax.conv_general_dilated(
        x_q, w_q, window_strides=(S, S), padding=[(P // 2, P // 2)] * 2,
        dimension_numbers=("NCHW", "OIHW", "NCHW")) + b_conv[None, :, None, None]
    ref = ref_conv.reshape(B, E, -1).transpose(0, 2, 1)
    mu = ref.mean(-1, keepdims=True)
    var = ((ref - mu) ** 2).mean(-1, keepdims=True)
    ref = (ref - mu) / jnp.sqrt(var + 1e-5) * gamma + beta

    assert tokens.shape == (B, H_out * W_out, E)
    assert H_out == (HW + 2 * (P // 2) - P) // S + 1 and W_out == H_out
    max_err = jnp.max(jnp.abs(tokens - ref))
    assert jnp.allclose(tokens, ref, atol=5e-4, rtol=5e-4), f"max abs err = {max_err}"

    print("KERNEL_OK")
</pallas_src>

<mosaic_0001>
module attributes {stable_mosaic.version = 11 : i64} {
  func.func @_patch_embed_kernel(%arg0: i32, %arg1: memref<32x256xbf16, #tpu.memory_space<vmem>>, %arg2: memref<256x128xbf16, #tpu.memory_space<vmem>>, %arg3: memref<1x128xf32, #tpu.memory_space<vmem>>, %arg4: memref<1x128xf32, #tpu.memory_space<vmem>>, %arg5: memref<1x128xf32, #tpu.memory_space<vmem>>, %arg6: memref<32x128xf32, #tpu.memory_space<vmem>>) attributes {dimension_semantics = [#tpu.dimension_semantics<parallel>], iteration_bounds = array<i64: 1>, scalar_prefetch = 0 : i64, scratch_operands = 0 : i64, tpu.core_type = #tpu.core_type<tc>, window_params = [{transform_indices = @transform_0, window_bounds = array<i64: 32, 256>}, {pipeline_mode = #tpu.pipeline_mode<synchronous>, transform_indices = @transform_1, window_bounds = array<i64: 256, 128>}, {pipeline_mode = #tpu.pipeline_mode<synchronous>, transform_indices = @transform_2, window_bounds = array<i64: 1, 128>}, {pipeline_mode = #tpu.pipeline_mode<synchronous>, transform_indices = @transform_3, window_bounds = array<i64: 1, 128>}, {pipeline_mode = #tpu.pipeline_mode<synchronous>, transform_indices = @transform_4, window_bounds = array<i64: 1, 128>}, {transform_indices = @transform_5, window_bounds = array<i64: 32, 128>}]} {
    %c0 = arith.constant 0 : index
    %c0_0 = arith.constant 0 : index
    %0 = vector.load %arg1[%c0, %c0_0] : memref<32x256xbf16, #tpu.memory_space<vmem>>, vector<32x256xbf16>
    %c0_1 = arith.constant 0 : index
    %c0_2 = arith.constant 0 : index
    %1 = vector.load %arg2[%c0_1, %c0_2] : memref<256x128xbf16, #tpu.memory_space<vmem>>, vector<256x128xbf16>
    %cst = arith.constant dense<0.000000e+00> : vector<32x128xf32>
    %2 = tpu.matmul %0, %1, %cst {dimension_numbers = #tpu.dot_dimension_numbers<[1], [0], [0], [1], [0, 0, 1, 1], [], []>} : vector<32x256xbf16>, vector<256x128xbf16>, vector<32x128xf32> -> vector<32x128xf32>
    %c0_3 = arith.constant 0 : index
    %c0_4 = arith.constant 0 : index
    %3 = vector.load %arg3[%c0_3, %c0_4] : memref<1x128xf32, #tpu.memory_space<vmem>>, vector<1x128xf32>
    %4 = vector.broadcast %3 : vector<1x128xf32> to vector<32x128xf32>
    %5 = arith.addf %2, %4 : vector<32x128xf32>
    %cst_5 = arith.constant dense<0.000000e+00> : vector<32xf32>
    %6 = vector.multi_reduction <add>, %5, %cst_5 [1] : vector<32x128xf32> to vector<32xf32>
    %7 = vector.shape_cast %6 : vector<32xf32> to vector<32x1xf32>
    %cst_6 = arith.constant 3.125000e-02 : f32
    %8 = vector.broadcast %cst_6 : f32 to vector<32x1xf32>
    %9 = arith.mulf %7, %8 : vector<32x1xf32>
    %10 = arith.mulf %5, %5 : vector<32x128xf32>
    %cst_7 = arith.constant dense<0.000000e+00> : vector<32xf32>
    %11 = vector.multi_reduction <add>, %10, %cst_7 [1] : vector<32x128xf32> to vector<32xf32>
    %12 = vector.shape_cast %11 : vector<32xf32> to vector<32x1xf32>
    %cst_8 = arith.constant 3.125000e-02 : f32
    %13 = vector.broadcast %cst_8 : f32 to vector<32x1xf32>
    %14 = arith.mulf %12, %13 : vector<32x1xf32>
    %15 = arith.mulf %9, %9 : vector<32x1xf32>
    %16 = arith.subf %14, %15 : vector<32x1xf32>
    %cst_9 = arith.constant 9.99999974E-6 : f32
    %17 = vector.broadcast %cst_9 : f32 to vector<32x1xf32>
    %18 = arith.addf %16, %17 : vector<32x1xf32>
    %19 = math.rsqrt %18 : vector<32x1xf32>
    %20 = vector.broadcast %9 : vector<32x1xf32> to vector<32x128xf32>
    %21 = arith.subf %5, %20 : vector<32x128xf32>
    %22 = vector.broadcast %19 : vector<32x1xf32> to vector<32x128xf32>
    %23 = arith.mulf %21, %22 : vector<32x128xf32>
    %c0_10 = arith.constant 0 : index
    %c0_11 = arith.constant 0 : index
    %24 = vector.load %arg4[%c0_10, %c0_11] : memref<1x128xf32, #tpu.memory_space<vmem>>, vector<1x128xf32>
    %25 = vector.broadcast %24 : vector<1x128xf32> to vector<32x128xf32>
    %26 = arith.mulf %23, %25 : vector<32x128xf32>
    %c0_12 = arith.constant 0 : index
    %c0_13 = arith.constant 0 : index
    %27 = vector.load %arg5[%c0_12, %c0_13] : memref<1x128xf32, #tpu.memory_space<vmem>>, vector<1x128xf32>
    %28 = vector.broadcast %27 : vector<1x128xf32> to vector<32x128xf32>
    %29 = arith.addf %26, %28 : vector<32x128xf32>
    %c0_14 = arith.constant 0 : index
    %c0_15 = arith.constant 0 : index
    %30 = vector.load %arg6[%c0_14, %c0_15] : memref<32x128xf32, #tpu.memory_space<vmem>>, vector<32x128xf32>
    tpu.vector_store %arg6[%c0_14, %c0_15], %29 {strides = array<i32>} : memref<32x128xf32, #tpu.memory_space<vmem>>, vector<32x128xf32>,
    return
  }
  func.func @transform_0(%arg0: i32) -> (i32, i32) {
    %c0_i32 = arith.constant 0 : i32
    %c0_i32_0 = arith.constant 0 : i32
    return %arg0, %c0_i32 : i32, i32
  }
  func.func @transform_1(%arg0: i32) -> (i32, i32) {
    %c0_i32 = arith.constant 0 : i32
    %c0_i32_0 = arith.constant 0 : i32
    %c0_i32_1 = arith.constant 0 : i32
    return %c0_i32, %c0_i32_0 : i32, i32
  }
  func.func @transform_2(%arg0: i32) -> (i32, i32) {
    %c0_i32 = arith.constant 0 : i32
    %c0_i32_0 = arith.constant 0 : i32
    %c0_i32_1 = arith.constant 0 : i32
    return %c0_i32, %c0_i32_0 : i32, i32
  }
  func.func @transform_3(%arg0: i32) -> (i32, i32) {
    %c0_i32 = arith.constant 0 : i32
    %c0_i32_0 = arith.constant 0 : i32
    %c0_i32_1 = arith.constant 0 : i32
    return %c0_i32, %c0_i32_0 : i32, i32
  }
  func.func @transform_4(%arg0: i32) -> (i32, i32) {
    %c0_i32 = arith.constant 0 : i32
    %c0_i32_0 = arith.constant 0 : i32
    %c0_i32_1 = arith.constant 0 : i32
    return %c0_i32, %c0_i32_0 : i32, i32
  }
  func.func @transform_5(%arg0: i32) -> (i32, i32) {
    %c0_i32 = arith.constant 0 : i32
    %c0_i32_0 = arith.constant 0 : i32
    return %arg0, %c0_i32 : i32, i32
  }
}

</mosaic_0001>

<bundles_post_ra>
// kernel: tpu_custom_call.1
= control target key start
LH: loop header
LB: loop body
LE: loop exit
PB: predicated region body
PF: predicated region fallthrough
CT: control target
= control target key end

     0   :  { %10 = vsyncpa [#allocation3], 0  ;;  %s591_s0 = inlined_call_operand.hbm [shape: bf16[32,256], index: 0, kind: input, shape index: {}]   ;;  %s592_s1 = inlined_call_operand.hbm [shape: bf16[256,128], index: 1, kind: input, shape index: {}]   ;;  %s593_s2 = inlined_call_operand.vmem [shape: f32[1,128], index: 2, kind: input, shape index: {}]   ;;  %s594_s3 = inlined_call_operand.vmem [shape: f32[1,128], index: 3, kind: input, shape index: {}]   ;;  %s595_s4 = inlined_call_operand.vmem [shape: f32[1,128], index: 4, kind: input, shape index: {}]   ;;  %s596_s5 = inlined_call_operand.hbm [shape: f32[32,128], index: 5, kind: output, shape index: {}]  }
   0x1   :  { %11 = vsyncpa [#allocation6], 0 }
   0x2   :  { %12 = vsyncpa [#allocation4], 0  ;;  %s524_s18 = smov [#allocation2]  }
   0x3   :  { %s18_s19 = sshll.u32 %s524_s18, 4  ;;  %s19_s19 = int_to_ptr.vmem [resolvable:$true] %s18_s19 }
   0x4   :  { %s466_s20 = scalar_lea.vmem %s19_s19, 512  ;;  %p471_p1 = scmp.lt.s32.totalorder %s19_s19, %s19_s19 }
   0x5   :  { %p467_p0 = scmp.ne.s32.totalorder %s19_s19, %s466_s20  ;;  %p472_p2 = scmp.lt.s32.totalorder %s466_s20, %s466_s20 }
   0x7   :  { %p473_p3 = por %p472_p2, %p471_p1 }
   0x9   :  { %p474_p4 = pnand %p473_p3, %p467_p0 }
   0xb   :  { %477 = shalt.err (!%p474_p4)
}
   0xc   :  { %s525_s21 = smov 128   ;;  %s526_s22 = smov 8  }
   0xd   :  { %24 = dma.hbm_to_vmem [thread:$0]  %s591_s0, 512, %s19_s19, [#allocation3], %s525_s21, %s525_s21, %s526_s22  }
   0xe   :  { %s527_s25 = smov [#allocation5]  }
   0xf   :  { %s30_s26 = sshll.u32 %s527_s25, 4  ;;  %s31_s26 = int_to_ptr.vmem [resolvable:$true] %s30_s26 }
  0x10   :  { %s486_s27 = scalar_lea.vmem %s31_s26, 2048  ;;  %p491_p6 = scmp.lt.s32.totalorder %s31_s26, %s31_s26 }
  0x11   :  { %p487_p5 = scmp.ne.s32.totalorder %s31_s26, %s486_s27  ;;  %p492_p7 = scmp.lt.s32.totalorder %s486_s27, %s486_s27 }
  0x13   :  { %p493_p8 = por %p492_p7, %p491_p6 }
  0x15   :  { %p494_p9 = pnand %p493_p8, %p487_p5 }
  0x17   :  { %497 = shalt.err (!%p494_p9)
}
  0x18   :  { %s528_s28 = smov 64   ;;  %s529_s29 = smov 4  }
  0x19   :  { %36 = dma.hbm_to_vmem [thread:$0]  %s592_s1, 2048, %s31_s26, [#allocation6], %s528_s28, %s528_s28, %s529_s29  }
  0x1a   :  { %518 = dma.done.wait [#allocation3], 512  }
  0x1b   :  { %519 = vsyncadd [#allocation3], 4294966784 }
  0x1c   :  { %520 = dma.done.wait [#allocation6], 2048  }
  0x1d   :  { %521 = vsyncadd [#allocation6], 4294965248  ;;  %v428_v0 = vld [vmem:[#allocation5 + $0x78] sm:$0xff]   ;;  %v430_v2 = vld [vmem:[#allocation5 + $0x70] sm:$0xff]  }
  0x1e   :  { %v429_v1 = vld [vmem:[#allocation5 + $0x38] sm:$0xff]   ;;  %377 = vmatprep.subr.bf16.mxu0 %v428_v0  ;;  %405 = vmatprep.subr.bf16.mxu1 %v428_v0  ;;  %v431_v3 = vld [vmem:[#allocation5 + $0x30] sm:$0xff]   ;;  %v432_v4 = vld [vmem:[#allocation5 + $0x68] sm:$0xff]  }
  0x1f   :  { %378 = vmatpush3.bf16.msra.mxu0 %v429_v1  ;;  %413 = vmatpush3.bf16.msra.mxu1 %v429_v1  ;;  %v433_v5 = vld [vmem:[#allocation5 + $0x28] sm:$0xff]   ;;  %v434_v6 = vld [vmem:[#allocation5 + $0x60] sm:$0xff]   ;;  %v436_v8 = vld [vmem:[#allocation5 + $0x58] sm:$0xff]  }
  0x20   :  { %379 = vmatprep.subr.bf16.mxu0 %v430_v2  ;;  %406 = vmatprep.subr.bf16.mxu1 %v430_v2  ;;  %v435_v7 = vld [vmem:[#allocation5 + $0x20] sm:$0xff]   ;;  %v437_v9 = vld [vmem:[#allocation5 + $0x18] sm:$0xff]   ;;  %v438_v10 = vld [vmem:[#allocation5 + $0x50] sm:$0xff]  }
  0x21   :  { %v446_v11 = vld [vmem:[#allocation2 + $0x4] ss:$8 sps:$4 sm:$0xff]   ;;  %v449_v12 = vld [vmem:[#allocation2 + $0x14] ss:$8 sps:$4 sm:$0xff]   ;;  %v444_v18 = vld [vmem:[#allocation2] ss:$8 sps:$4 sm:$0xff]  }
  0x22   :  { %v439_v13 = vld [vmem:[#allocation5 + $0x10] sm:$0xff]   ;;  %v440_v14 = vld [vmem:[#allocation5 + $0x48] sm:$0xff]   ;;  %241 = vmatprep.mubr.bf16.mxu0 %v446_v11  ;;  %249 = vmatprep.mubr.bf16.mxu1 %v449_v12  ;;  %v442_v16 = vld [vmem:[#allocation5 + $0x40] sm:$0xff]  }
  0x23   :  { %380 = vmatpush3.bf16.msra.mxu0 %v431_v3  ;;  %414 = vmatpush3.bf16.msra.mxu1 %v431_v3  ;;  %v441_v15 = vld [vmem:[#allocation5 + $0x8] sm:$0xff]   ;;  %v443_v17 = vld [vmem:[#allocation5] sm:$0xff]   ;;  %v447_v19 = vld [vmem:[#allocation2 + $0x10] ss:$8 sps:$4 sm:$0xff]  }
  0x24   :  { %381 = vmatprep.subr.bf16.mxu0 %v432_v4  ;;  %407 = vmatprep.subr.bf16.mxu1 %v432_v4  ;;  %v354_v22 = vld [vmem:[%s593_s2] ss:$0 sm:$0xff] }
  0x27   :  { %382 = vmatpush3.bf16.msra.mxu0 %v433_v5  ;;  %415 = vmatpush3.bf16.msra.mxu1 %v433_v5 }
  0x28   :  { %383 = vmatprep.subr.bf16.mxu0 %v434_v6  ;;  %408 = vmatprep.subr.bf16.mxu1 %v434_v6 }
  0x2b   :  { %384 = vmatpush3.bf16.msra.mxu0 %v435_v7  ;;  %416 = vmatpush3.bf16.msra.mxu1 %v435_v7  ;;  %v375_v7 = vld [vmem:[%s594_s3] ss:$0 sm:$0xff]  ;;  %s530_s3 = smov [#allocation7]  }
  0x2c   :  { %385 = vmatprep.subr.bf16.mxu0 %v436_v8  ;;  %409 = vmatprep.subr.bf16.mxu1 %v436_v8  ;;  %s341_s10 = sshll.u32 %s530_s3, 4  ;;  %s342_s10 = int_to_ptr.vmem [resolvable:$true] %s341_s10 }
  0x2d   :  { %p503_p11 = scmp.lt.s32.totalorder %s342_s10, %s342_s10 }
  0x2f   :  { %386 = vmatpush3.bf16.msra.mxu0 %v437_v9  ;;  %417 = vmatpush3.bf16.msra.mxu1 %v437_v9  ;;  %v376_v9 = vld [vmem:[%s595_s4] ss:$0 sm:$0xff]  ;;  %s498_s4 = scalar_lea.vmem %s342_s10, 512 }
  0x30   :  { %387 = vmatprep.subr.bf16.mxu0 %v438_v10  ;;  %410 = vmatprep.subr.bf16.mxu1 %v438_v10  ;;  %p499_p10 = scmp.ne.s32.totalorder %s342_s10, %s498_s4  ;;  %p504_p12 = scmp.lt.s32.totalorder %s498_s4, %s498_s4 }
  0x32   :  { %p505_p13 = por %p504_p12, %p503_p11 }
  0x33   :  { %388 = vmatpush3.bf16.msra.mxu0 %v439_v13  ;;  %418 = vmatpush3.bf16.msra.mxu1 %v439_v13 }
  0x34   :  { %389 = vmatprep.subr.bf16.mxu0 %v440_v14  ;;  %411 = vmatprep.subr.bf16.mxu1 %v440_v14  ;;  %p506_p0 = pnand %p505_p13, %p499_p10 }
  0x37   :  { %390 = vmatpush3.bf16.msra.mxu0 %v441_v15  ;;  %419 = vmatpush3.bf16.msra.mxu1 %v441_v15 }
  0x38   :  { %391 = vmatprep.subr.bf16.mxu0 %v442_v16  ;;  %412 = vmatprep.subr.bf16.mxu1 %v442_v16 }
  0x3b   :  { %392 = vmatpush3.bf16.msra.mxu0 %v443_v17  ;;  %420 = vmatpush3.bf16.msra.mxu1 %v443_v17 }
  0x3e   :  { %242 = vmatmul.mubr.bf16.vlgmr.msra.gmra.mxu0 %v444_v18  ;;  %250 = vmatmul.mubr.bf16.vlgmr.msra.gmra.mxu1 %v447_v19 }
  0xfe   :  { %v393_v20 = vpop.f32.mrf.mxu0  ;;  %v399_v21 = vpop.f32.mrf.mxu1 }
 0x100   :  { %v394_v23 = vpop.f32.mrf.mxu0  ;;  %v400_v24 = vpop.f32.mrf.mxu1 }
 0x101   :  { %v395_v25 = vadd.f32 %v394_v23, %v393_v20  ;;  %v401_v26 = vadd.f32 %v400_v24, %v399_v21 }
 0x102   :  { %v396_v27 = vpop.f32.mrf.mxu0  ;;  %v402_v28 = vpop.f32.mrf.mxu1 }
 0x103   :  { %v244_v29 = vadd.f32 %v395_v25, %v354_v22  ;;  %v573_v30 = vadd.f32 %v401_v26, %v354_v22 }
 0x104   :  { %v397_v31 = vpop.f32.mrf.mxu0  ;;  %v403_v32 = vpop.f32.mrf.mxu1 }
 0x105   :  { %v398_v33 = vadd.f32 %v397_v31, %v396_v27  ;;  %v404_v34 = vadd.f32 %v403_v32, %v402_v28  ;;  %262 = vadd.xlane.f32.xlu1 %v573_v30  ;;  %258 = vadd.xlane.f32.xlu0 %v244_v29  ;;  %v270_v37 = vmul.f32 %v244_v29, %v244_v29 }
 0x106   :  { %v272_v40 = vmul.f32 %v573_v30, %v573_v30 }
 0x107   :  { %v247_v35 = vadd.f32 %v398_v33, %v354_v22  ;;  %v255_v36 = vadd.f32 %v404_v34, %v354_v22 }
 0x109   :  { %264 = vadd.xlane.f32.xlu1 %v255_v36  ;;  %274 = vadd.xlane.f32.xlu0 %v270_v37  ;;  %v271_v38 = vmul.f32 %v247_v35, %v247_v35  ;;  %v273_v39 = vmul.f32 %v255_v36, %v255_v36 }
 0x10d   :  { %276 = vadd.xlane.f32.xlu1 %v271_v38  ;;  %260 = vadd.xlane.f32.xlu0 %v247_v35 }
 0x111   :  { %280 = vadd.xlane.f32.xlu1 %v273_v39  ;;  %278 = vadd.xlane.f32.xlu0 %v272_v40 }
 0x18e   :  { %v263_v41 = vpop.xlane.xlu1 %262  ;;  %v259_v42 = vpop.xlane.xlu0 %258 }
 0x18f   :  { %v266_v43 = vmul.f32 0.03125, %v259_v42  ;;  %v268_v49 = vmul.f32 0.03125, %v263_v41 }
 0x191   :  { %v286_v46 = vmul.f32 %v266_v43, %v266_v43  ;;  %v288_v57 = vmul.f32 %v268_v49, %v268_v49  ;;  %v302_v5 = vsub.f32 %v244_v29, %v266_v43  ;;  %v304_v17 = vsub.f32 %v573_v30, %v268_v49 }
 0x192   :  { %v265_v44 = vpop.xlane.xlu1 %264  ;;  %v275_v45 = vpop.xlane.xlu0 %274 }
 0x193   :  { %v282_v47 = vmul.f32 0.03125, %v275_v45  ;;  %v269_v52 = vmul.f32 0.03125, %v265_v44 }
 0x195   :  { %v290_v48 = vsub.f32 %v282_v47, %v286_v46  ;;  %v289_v60 = vmul.f32 %v269_v52, %v269_v52  ;;  %v305_v14 = vsub.f32 %v255_v36, %v269_v52 }
 0x196   :  { %v277_v50 = vpop.xlane.xlu1 %276  ;;  %v261_v51 = vpop.xlane.xlu0 %260 }
 0x197   :  { %v294_v53 = vadd.f32 1e-05, %v290_v48  ;;  %v267_v54 = vmul.f32 0.03125, %v261_v51  ;;  %v283_v55 = vmul.f32 0.03125, %v277_v50 }
 0x199   :  { %450 = vrsqrt.f32 %v294_v53  ;;  %v287_v56 = vmul.f32 %v267_v54, %v267_v54  ;;  %v303_v11 = vsub.f32 %v247_v35, %v267_v54 }
 0x19a   :  { %v281_v58 = vpop.xlane.xlu1 %280  ;;  %v279_v59 = vpop.xlane.xlu0 %278 }
 0x19b   :  { %v291_v61 = vsub.f32 %v283_v55, %v287_v56  ;;  %v285_v62 = vmul.f32 0.03125, %v281_v58  ;;  %v284_v63 = vmul.f32 0.03125, %v279_v59 }
 0x19d   :  { %v295_v0 = vadd.f32 1e-05, %v291_v61  ;;  %v293_v1 = vsub.f32 %v285_v62, %v289_v60  ;;  %v292_v2 = vsub.f32 %v284_v63, %v288_v57 }
 0x19f   :  { %452 = vrsqrt.f32 %v295_v0  ;;  %v297_v3 = vadd.f32 1e-05, %v293_v1  ;;  %v296_v4 = vadd.f32 1e-05, %v292_v2 }
 0x1a1   :  { %454 = vrsqrt.f32 %v297_v3 }
 0x1a2   :  { %456 = vrsqrt.f32 %v296_v4 }
 0x1a6   :  { %v451_v6 = vpop.eup %450 }
 0x1a7   :  { %v306_v8 = vmul.f32 %v451_v6, %v302_v5 }
 0x1a9   :  { %v317_v10 = vmul.f32 %v375_v7, %v306_v8 }
 0x1ab   :  { %v328_v12 = vadd.f32 %v376_v9, %v317_v10 }
 0x1ac   :  { %v453_v13 = vpop.eup %452 }
 0x1ad   :  { %v307_v15 = vmul.f32 %v453_v13, %v303_v11  ;;  %332 = vst [vmem:[#allocation7] sm:$0xff] %v328_v12 }
 0x1ae   :  { %v455_v16 = vpop.eup %454 }
 0x1af   :  { %v457_v18 = vpop.eup %456  ;;  %v318_v19 = vmul.f32 %v375_v7, %v307_v15  ;;  %v309_v20 = vmul.f32 %v455_v16, %v305_v14 }
 0x1b0   :  { %v308_v21 = vmul.f32 %v457_v18, %v304_v17 }
 0x1b1   :  { %v329_v22 = vadd.f32 %v376_v9, %v318_v19  ;;  %v320_v23 = vmul.f32 %v375_v7, %v309_v20 }
 0x1b2   :  { %v319_v24 = vmul.f32 %v375_v7, %v308_v21 }
 0x1b3   :  { %333 = vst [vmem:[#allocation7 + $0x8] sm:$0xff] %v329_v22  ;;  %v331_v25 = vadd.f32 %v376_v9, %v320_v23 }
 0x1b4   :  { %v330_v26 = vadd.f32 %v376_v9, %v319_v24 }
 0x1b5   :  { %335 = vst [vmem:[#allocation7 + $0x18] sm:$0xff] %v331_v25 }
 0x1b6   :  { %334 = vst [vmem:[#allocation7 + $0x10] sm:$0xff] %v330_v26 }
 0x1b7   :  { %509 = shalt.err (!%p506_p0)
}
 0x1b8   :  { %347 = dma.vmem_to_hbm [thread:$0]  %s342_s10, 512, %s596_s5, [#allocation4], %s525_s21, %s525_s21, %s526_s22  }
 0x1b9   :  { %522 = dma.done.wait [#allocation4], 512  }
 0x1ba   :  { %523 = vsyncadd [#allocation4], 4294966784 }
 0x1bb   :  { %351 = vsyncpa [#allocation3], 1 }
 0x1bc   :  { %352 = vsyncpa [#allocation6], 1 }
 0x1bd   :  { %353 = vsyncpa [#allocation4], 1 }

</bundles_post_ra>
